<compile_context>
chip_gen: v6e
topology: v6e:2x2x1
jax: 0.10.0
libtpu: 0.0.40
codegen_flags: <defaults>
</compile_context>

<pallas_src>
import jax
import jax.numpy as jnp
from jax import lax
from jax.experimental import pallas as pl
from jax.experimental.pallas import tpu as pltpu


def _round_up(x, m):
    return ((x + m - 1) // m) * m


def _make_kernel(chunk, n_chunks):
    """Kernel over one (TB, D_in) f32 batch tile -> (TB, 1) f32 probabilities."""

    def kernel(x_ref, w1_ref, b1_ref, w2_ref, b2_ref, w3_ref, b3_ref, out_ref):
        # Hoist the resident weights/biases out of the chunk loop.
        w1 = w1_ref[...]
        b1 = b1_ref[...]
        w2 = w2_ref[...]
        b2 = b2_ref[...]
        w3 = w3_ref[...]
        b3 = b3_ref[...]

        def mlp(xc):
            # Layer 1: MXU matmul, f32 accumulate; bias + ReLU on the VPU.
            z1 = jnp.dot(xc, w1, preferred_element_type=jnp.float32) + b1
            h1 = jnp.maximum(z1, 0.0)
            # Layer 2: same pattern.
            z2 = jnp.dot(h1, w2, preferred_element_type=jnp.float32) + b2
            h2 = jnp.maximum(z2, 0.0)
            # Layer 3 (out width 1): broadcast-multiply + lane reduction (XLU).
            z3 = jnp.sum(h2 * w3, axis=-1, keepdims=True) + b3
            # Clamp so exp never overflows; sigmoid via EUP exp + approx vrcp.
            z3 = jnp.clip(z3, -30.0, 30.0)
            return pl.reciprocal(1.0 + jnp.exp(-z3), approx=True)

        if n_chunks == 1:
            out_ref[...] = mlp(x_ref[...])
        else:
            def body(c, carry):
                r0 = pl.multiple_of(c * chunk, chunk)
                out_ref[pl.ds(r0, chunk), :] = mlp(x_ref[pl.ds(r0, chunk), :])
                return carry

            lax.fori_loop(0, n_chunks, body, 0, unroll=False)

    return kernel


def _choose_tile(B, block_b):
    """Pick the batch tile size (rows per grid step)."""
    B8 = _round_up(B, 8)
    if B8 <= 512:
        return B8                      # single small tile; padding <= 7 rows
    n = pl.cdiv(B8, block_b)
    if n == 1:
        n = 2                          # keep both v7x TensorCores busy
    # Round the tile to the 256-row chunk size; the ragged last grid step is
    # handled by Pallas block masking (no jnp.pad copy of x).
    return _round_up(pl.cdiv(B8, n), 256)


def reference_forward(encoding, params):
    """Pure-JAX (XLA) forward, also used as the small-batch fallback."""
    h1 = jnp.maximum(encoding @ params["w1"] + params["b1"], 0.0)
    h2 = jnp.maximum(h1 @ params["w2"] + params["b2"], 0.0)
    return jax.nn.sigmoid(h2 @ params["w3"] + params["b3"])


def domain_classifier_forward(encoding, params, *, block_b=2048,
                              xla_fallback_max_rows=0):
    """encoding: (B, input_dim) float32. params: dict of w1,b1,w2,b2,w3,b3 (f32).

    xla_fallback_max_rows: if B <= this, use plain XLA (the Pallas launch +
    HBM round trip only pays off at large B).  Default 0 = always use Pallas.
    """
    B, input_dim = encoding.shape
    if B <= xla_fallback_max_rows:
        return reference_forward(encoding, params)

    w1, b1 = params["w1"], params["b1"]
    w2, b2 = params["w2"], params["b2"]
    w3, b3 = params["w3"], params["b3"]
    h1_dim = w1.shape[1]
    h2_dim = w2.shape[1]
    w3_row = w3.reshape(1, h2_dim)

    TB = _choose_tile(B, block_b)
    CHUNK = 256 if TB >= 512 else TB
    n_chunks = TB // CHUNK
    grid = (pl.cdiv(B, TB),)

    resident = lambda shape: pl.BlockSpec(shape, lambda i: (0, 0))

    cost = pl.CostEstimate(
        flops=2 * B * (input_dim * h1_dim + h1_dim * h2_dim + h2_dim),
        transcendentals=B,
        bytes_accessed=(B * input_dim * 4                            # x stream (f32)
                        + (input_dim * h1_dim + h1_dim * h2_dim) * 4  # weights
                        + (h1_dim + 2 * h2_dim + 1) * 4               # biases + w3 row
                        + B * 4),                                     # output
    )

    out = pl.pallas_call(
        _make_kernel(CHUNK, n_chunks),
        out_shape=jax.ShapeDtypeStruct((B, 1), jnp.float32),
        grid=grid,
        in_specs=[
            pl.BlockSpec((TB, input_dim), lambda i: (i, 0)),   # x: streamed per tile
            resident(w1.shape), resident(b1.shape),            # weights/biases resident
            resident(w2.shape), resident(b2.shape),
            resident(w3_row.shape), resident(b3.shape),
        ],
        out_specs=pl.BlockSpec((TB, 1), lambda i: (i, 0)),
        compiler_params=pltpu.CompilerParams(
            dimension_semantics=("parallel",),   # shard batch tiles across v7x's 2 TCs
            vmem_limit_bytes=32 * 1024 * 1024,   # safe ceiling on v7x's 64 MiB parts
        ),
        cost_estimate=cost,
    )(encoding, w1, b1, w2, b2, w3_row, b3)

    return out


def init_params(key, input_dim, hidden_1_dim, hidden_2_dim):
    """Deterministic init matching nn.Linear shapes (weights stored transposed
    as (in, out); biases kept 2D (1, out) for TPU-friendly layouts)."""
    ks = jax.random.split(key, 6)

    def linear(kw, kb, fan_in, fan_out):
        bound = 1.0 / jnp.sqrt(fan_in)
        w = jax.random.uniform(kw, (fan_in, fan_out), jnp.float32, -bound, bound)
        b = jax.random.uniform(kb, (1, fan_out), jnp.float32, -bound, bound)
        return w, b

    w1, b1 = linear(ks[0], ks[1], input_dim, hidden_1_dim)
    w2, b2 = linear(ks[2], ks[3], hidden_1_dim, hidden_2_dim)
    w3, b3 = linear(ks[4], ks[5], hidden_2_dim, 1)
    return {"w1": w1, "b1": b1, "w2": w2, "b2": b2, "w3": w3, "b3": b3}


if __name__ == "__main__":
    # Shapes implied by the module: args.hidden_dim=32, args.hidden_dim_dom1=64,
    # args.hidden_dim_dom2=32.
    input_dim, h1_dim, h2_dim = 32, 64, 32

    key = jax.random.PRNGKey(0)
    k_p, k_x1, k_x2 = jax.random.split(key, 3)
    params = init_params(k_p, input_dim, h1_dim, h2_dim)

    # Case 1: the module's tiny default batch (single small tile path).
    enc_small = jax.random.normal(k_x1, (8, input_dim), dtype=jnp.float32)
    out_small = jax.block_until_ready(domain_classifier_forward(enc_small, params))
    ref_small = reference_forward(enc_small, params)
    assert out_small.shape == (8, 1)
    assert jnp.allclose(out_small, ref_small, atol=5e-3, rtol=5e-3), "mismatch (small)"

    # Case 2: mid-size batch exercising the 2-tile grid, 256-row chunk loop and
    # the ragged last block (no jnp.pad copy).
    enc_mid = jax.random.normal(k_x2, (1040, input_dim), dtype=jnp.float32)
    out_mid = jax.block_until_ready(domain_classifier_forward(enc_mid, params))
    ref_mid = reference_forward(enc_mid, params)
    assert out_mid.shape == (1040, 1)
    assert jnp.allclose(out_mid, ref_mid, atol=5e-3, rtol=5e-3), "mismatch (mid)"

    print("KERNEL_OK")
</pallas_src>

<mosaic_0001>
module attributes {stable_mosaic.version = 11 : i64} {
  func.func @kernel(%arg0: i32, %arg1: memref<8x32xf32, #tpu.memory_space<vmem>>, %arg2: memref<32x64xf32, #tpu.memory_space<vmem>>, %arg3: memref<1x64xf32, #tpu.memory_space<vmem>>, %arg4: memref<64x32xf32, #tpu.memory_space<vmem>>, %arg5: memref<1x32xf32, #tpu.memory_space<vmem>>, %arg6: memref<1x32xf32, #tpu.memory_space<vmem>>, %arg7: memref<1x1xf32, #tpu.memory_space<vmem>>, %arg8: memref<8x1xf32, #tpu.memory_space<vmem>>) attributes {dimension_semantics = [#tpu.dimension_semantics<parallel>], iteration_bounds = array<i64: 1>, scalar_prefetch = 0 : i64, scratch_operands = 0 : i64, tpu.core_type = #tpu.core_type<tc>, window_params = [{transform_indices = @transform_0, window_bounds = array<i64: 8, 32>}, {pipeline_mode = #tpu.pipeline_mode<synchronous>, transform_indices = @transform_1, window_bounds = array<i64: 32, 64>}, {pipeline_mode = #tpu.pipeline_mode<synchronous>, transform_indices = @transform_2, window_bounds = array<i64: 1, 64>}, {pipeline_mode = #tpu.pipeline_mode<synchronous>, transform_indices = @transform_3, window_bounds = array<i64: 64, 32>}, {pipeline_mode = #tpu.pipeline_mode<synchronous>, transform_indices = @transform_4, window_bounds = array<i64: 1, 32>}, {pipeline_mode = #tpu.pipeline_mode<synchronous>, transform_indices = @transform_5, window_bounds = array<i64: 1, 32>}, {pipeline_mode = #tpu.pipeline_mode<synchronous>, transform_indices = @transform_6, window_bounds = array<i64: 1, 1>}, {transform_indices = @transform_7, window_bounds = array<i64: 8, 1>}]} {
    %c0 = arith.constant 0 : index
    %c0_0 = arith.constant 0 : index
    %0 = vector.load %arg2[%c0, %c0_0] : memref<32x64xf32, #tpu.memory_space<vmem>>, vector<32x64xf32>
    %c0_1 = arith.constant 0 : index
    %c0_2 = arith.constant 0 : index
    %1 = vector.load %arg3[%c0_1, %c0_2] : memref<1x64xf32, #tpu.memory_space<vmem>>, vector<1x64xf32>
    %c0_3 = arith.constant 0 : index
    %c0_4 = arith.constant 0 : index
    %2 = vector.load %arg4[%c0_3, %c0_4] : memref<64x32xf32, #tpu.memory_space<vmem>>, vector<64x32xf32>
    %c0_5 = arith.constant 0 : index
    %c0_6 = arith.constant 0 : index
    %3 = vector.load %arg5[%c0_5, %c0_6] : memref<1x32xf32, #tpu.memory_space<vmem>>, vector<1x32xf32>
    %c0_7 = arith.constant 0 : index
    %c0_8 = arith.constant 0 : index
    %4 = vector.load %arg6[%c0_7, %c0_8] : memref<1x32xf32, #tpu.memory_space<vmem>>, vector<1x32xf32>
    %c0_9 = arith.constant 0 : index
    %c0_10 = arith.constant 0 : index
    %5 = vector.load %arg7[%c0_9, %c0_10] : memref<1x1xf32, #tpu.memory_space<vmem>>, vector<1x1xf32>
    %c0_11 = arith.constant 0 : index
    %c0_12 = arith.constant 0 : index
    %6 = vector.load %arg1[%c0_11, %c0_12] : memref<8x32xf32, #tpu.memory_space<vmem>>, vector<8x32xf32>
    %cst = arith.constant dense<0.000000e+00> : vector<8x64xf32>
    %7 = tpu.matmul %6, %0, %cst {dimension_numbers = #tpu.dot_dimension_numbers<[1], [0], [0], [1], [0, 0, 1, 1], [], []>} : vector<8x32xf32>, vector<32x64xf32>, vector<8x64xf32> -> vector<8x64xf32>
    %8 = vector.broadcast %1 : vector<1x64xf32> to vector<8x64xf32>
    %9 = arith.addf %7, %8 : vector<8x64xf32>
    %cst_13 = arith.constant 0.000000e+00 : f32
    %10 = vector.broadcast %cst_13 : f32 to vector<8x64xf32>
    %11 = arith.maximumf %9, %10 : vector<8x64xf32>
    %cst_14 = arith.constant dense<0.000000e+00> : vector<8x32xf32>
    %12 = tpu.matmul %11, %2, %cst_14 {dimension_numbers = #tpu.dot_dimension_numbers<[1], [0], [0], [1], [0, 0, 1, 1], [], []>} : vector<8x64xf32>, vector<64x32xf32>, vector<8x32xf32> -> vector<8x32xf32>
    %13 = vector.broadcast %3 : vector<1x32xf32> to vector<8x32xf32>
    %14 = arith.addf %12, %13 : vector<8x32xf32>
    %cst_15 = arith.constant 0.000000e+00 : f32
    %15 = vector.broadcast %cst_15 : f32 to vector<8x32xf32>
    %16 = arith.maximumf %14, %15 : vector<8x32xf32>
    %17 = vector.broadcast %4 : vector<1x32xf32> to vector<8x32xf32>
    %18 = arith.mulf %16, %17 : vector<8x32xf32>
    %cst_16 = arith.constant dense<0.000000e+00> : vector<8xf32>
    %19 = vector.multi_reduction <add>, %18, %cst_16 [1] : vector<8x32xf32> to vector<8xf32>
    %20 = vector.shape_cast %19 : vector<8xf32> to vector<8x1xf32>
    %21 = vector.broadcast %5 : vector<1x1xf32> to vector<8x1xf32>
    %22 = arith.addf %20, %21 : vector<8x1xf32>
    %cst_17 = arith.constant -3.000000e+01 : f32
    %cst_18 = arith.constant 3.000000e+01 : f32
    %23 = vector.broadcast %cst_17 : f32 to vector<8x1xf32>
    %24 = arith.maximumf %23, %22 : vector<8x1xf32>
    %25 = vector.broadcast %cst_18 : f32 to vector<8x1xf32>
    %26 = arith.minimumf %25, %24 : vector<8x1xf32>
    %cst_19 = arith.constant 0.000000e+00 : f32
    %27 = vector.broadcast %cst_19 : f32 to vector<8x1xf32>
    %28 = arith.subf %27, %26 : vector<8x1xf32>
    %29 = math.exp %28 : vector<8x1xf32>
    %cst_20 = arith.constant 1.000000e+00 : f32
    %30 = vector.broadcast %cst_20 : f32 to vector<8x1xf32>
    %31 = arith.addf %30, %29 : vector<8x1xf32>
    %32 = tpu.reciprocal %31 {approx = true} : vector<8x1xf32> -> vector<8x1xf32>
    %c0_21 = arith.constant 0 : index
    %c0_22 = arith.constant 0 : index
    %33 = vector.load %arg8[%c0_21, %c0_22] : memref<8x1xf32, #tpu.memory_space<vmem>>, vector<8x1xf32>
    tpu.vector_store %arg8[%c0_21, %c0_22], %32 {strides = array<i32>} : memref<8x1xf32, #tpu.memory_space<vmem>>, vector<8x1xf32>,
    return
  }
  func.func @transform_0(%arg0: i32) -> (i32, i32) {
    %c0_i32 = arith.constant 0 : i32
    %c0_i32_0 = arith.constant 0 : i32
    return %arg0, %c0_i32 : i32, i32
  }
  func.func @transform_1(%arg0: i32) -> (i32, i32) {
    %c0_i32 = arith.constant 0 : i32
    %c0_i32_0 = arith.constant 0 : i32
    %c0_i32_1 = arith.constant 0 : i32
    return %c0_i32, %c0_i32_0 : i32, i32
  }
  func.func @transform_2(%arg0: i32) -> (i32, i32) {
    %c0_i32 = arith.constant 0 : i32
    %c0_i32_0 = arith.constant 0 : i32
    %c0_i32_1 = arith.constant 0 : i32
    return %c0_i32, %c0_i32_0 : i32, i32
  }
  func.func @transform_3(%arg0: i32) -> (i32, i32) {
    %c0_i32 = arith.constant 0 : i32
    %c0_i32_0 = arith.constant 0 : i32
    %c0_i32_1 = arith.constant 0 : i32
    return %c0_i32, %c0_i32_0 : i32, i32
  }
  func.func @transform_4(%arg0: i32) -> (i32, i32) {
    %c0_i32 = arith.constant 0 : i32
    %c0_i32_0 = arith.constant 0 : i32
    %c0_i32_1 = arith.constant 0 : i32
    return %c0_i32, %c0_i32_0 : i32, i32
  }
  func.func @transform_5(%arg0: i32) -> (i32, i32) {
    %c0_i32 = arith.constant 0 : i32
    %c0_i32_0 = arith.constant 0 : i32
    %c0_i32_1 = arith.constant 0 : i32
    return %c0_i32, %c0_i32_0 : i32, i32
  }
  func.func @transform_6(%arg0: i32) -> (i32, i32) {
    %c0_i32 = arith.constant 0 : i32
    %c0_i32_0 = arith.constant 0 : i32
    %c0_i32_1 = arith.constant 0 : i32
    return %c0_i32, %c0_i32_0 : i32, i32
  }
  func.func @transform_7(%arg0: i32) -> (i32, i32) {
    %c0_i32 = arith.constant 0 : i32
    %c0_i32_0 = arith.constant 0 : i32
    return %arg0, %c0_i32 : i32, i32
  }
}

</mosaic_0001>

<bundles_post_ra>
// kernel: tpu_custom_call.1
= control target key start
LH: loop header
LB: loop body
LE: loop exit
PB: predicated region body
PF: predicated region fallthrough
CT: control target
= control target key end

     0   :  { %v294_v0 = vmov 0.0   ;;  %vm295_vm0 = vmmov 0   ;;  %vm51_vm1 = vcmask 261120   ;;  %vm132_vm2 = vcmask 523264   ;;  %s394_s1 = inlined_call_operand.vmem [shape: f32[32,64], index: 1, kind: input, shape index: {}]   ;;  %s395_s3 = inlined_call_operand.vmem [shape: f32[64,32], index: 3, kind: input, shape index: {}]   ;;  %s396_s0 = inlined_call_operand.vmem [shape: f32[8,32], index: 0, kind: input, shape index: {}]   ;;  %s397_s2 = inlined_call_operand.vmem [shape: f32[1,64], index: 2, kind: input, shape index: {}]   ;;  %s398_s6 = inlined_call_operand.<no memory space> [shape: f32[1,1], index: 6, kind: input, shape index: {}]   ;;  %s399_s4 = inlined_call_operand.vmem [shape: f32[1,32], index: 4, kind: input, shape index: {}]   ;;  %s400_s5 = inlined_call_operand.vmem [shape: f32[1,32], index: 5, kind: input, shape index: {}]   ;;  %s401_s7 = inlined_call_operand.vmem [shape: f32[8,1], index: 7, kind: output, shape index: {}]  }
   0x1   :  { %258 = vmatprep.subr.mxu0 %v294_v0  ;;  %v31_v1 = vld [vmem:[%s394_s1 + $0x18] sm:$0xff]  ;;  %v30_v2 = vld [vmem:[%s394_s1 + $0x10] sm:$0xff]  ;;  %266 = vmatprep.mubr.msk.f32.mxu0 %vm295_vm0, %v294_v0  ;;  %v29_v4 = vld [vmem:[%s394_s1 + $0x8] sm:$0xff]  ;;  %v12_v19 = vstv %s398_s6  ;;  %vm231_vm3 = vcmask 7168  }
   0x2   :  { %259 = vmatpush3.msra.mxu0 %v31_v1  ;;  %269 = vmatprep.subr.mxu1 %v294_v0  ;;  %v40_v3 = vld [vmem:[%s395_s3 + $0x38] sm:$0xff]  ;;  %v39_v5 = vld [vmem:[%s395_s3 + $0x30] sm:$0xff]  ;;  %v38_v6 = vld [vmem:[%s395_s3 + $0x28] sm:$0xff]  ;;  %13 = vst [vmem:[#allocation2] sm:$0x1] %v12_v19 }
   0x3   :  { %260 = vmatprep.subr.mxu0 %v294_v0  ;;  %270 = vmatpush3.msra.mxu1 %v40_v3  ;;  %v28_v7 = vld [vmem:[%s394_s1] sm:$0xff]  ;;  %v36_v10 = vld [vmem:[%s395_s3 + $0x18] sm:$0xff]  ;;  %v35_v11 = vld [vmem:[%s395_s3 + $0x10] sm:$0xff] }
   0x4   :  { %261 = vmatpush3.msra.mxu0 %v30_v2  ;;  %271 = vmatprep.subr.mxu1 %v294_v0  ;;  %v44_v8 = vld [vmem:[%s396_s0] sm:$0xff]  ;;  %v34_v12 = vld [vmem:[%s395_s3 + $0x8] sm:$0xff] }
   0x5   :  { %262 = vmatprep.subr.mxu0 %v294_v0  ;;  %272 = vmatpush3.msra.mxu1 %v39_v5  ;;  %v37_v9 = vld [vmem:[%s395_s3 + $0x20] sm:$0xff] }
   0x6   :  { %263 = vmatpush3.msra.mxu0 %v29_v4  ;;  %273 = vmatprep.subr.mxu1 %v294_v0  ;;  %v33_v13 = vld [vmem:[%s395_s3] sm:$0xff] }
   0x7   :  { %264 = vmatprep.subr.mxu0 %v294_v0  ;;  %274 = vmatpush3.msra.mxu1 %v38_v6  ;;  %v237_v14 = vld [vmem:[%s397_s2] ss:$0 sm:$0xff] }
   0x8   :  { %265 = vmatpush3.msra.mxu0 %v28_v7  ;;  %275 = vmatprep.subr.mxu1 %v294_v0  ;;  %v239_v20 = vld [vmem:[%s399_s4] ss:$0 sm:$0xff] }
   0x9   :  { %267 = vmatmul.mubr.msk.f32.vlgmr.msra.gmra.mxu0 %vm51_vm1, %v44_v8  ;;  %276 = vmatpush3.msra.mxu1 %v37_v9  ;;  %v241_v24 = vld [vmem:[%s400_s5] ss:$0 sm:$0xff] }
   0xa   :  { %277 = vmatprep.subr.mxu1 %v294_v0  ;;  %285 = vmatprep.mubr.msk.f32.mxu1 %vm295_vm0, %v294_v0  ;;  %v242_v28 = vld [vmem:[#allocation2] ss:$0 sm:$0xff] }
   0xb   :  { %278 = vmatpush3.msra.mxu1 %v36_v10 }
   0xc   :  { %279 = vmatprep.subr.mxu1 %v294_v0 }
   0xd   :  { %280 = vmatpush3.msra.mxu1 %v35_v11 }
   0xe   :  { %281 = vmatprep.subr.mxu1 %v294_v0 }
   0xf   :  { %282 = vmatpush3.msra.mxu1 %v34_v12 }
  0x10   :  { %283 = vmatprep.subr.mxu1 %v294_v0 }
  0x11   :  { %284 = vmatpush3.msra.mxu1 %v33_v13 }
  0xc9   :  { %v121_v15 = vpop.f32.mrf.mxu0 }
  0xca   :  { %v122_v16 = vadd.f32 %v237_v14, %v121_v15 }
  0xcb   :  { %v268_v17 = vpop.f32.mrf.mxu0 }
  0xcc   :  { %v125_v18 = vmax.f32 %v122_v16, 0.0 }
  0xce   :  { %286 = vmatmul.mubr.msk.f32.vlgmr.msra.gmra.mxu1 %vm132_vm2, %v125_v18 }
 0x18e   :  { %v202_v21 = vpop.f32.mrf.mxu1 }
 0x18f   :  { %v203_v22 = vadd.f32 %v239_v20, %v202_v21 }
 0x190   :  { %v287_v23 = vpop.f32.mrf.mxu1 }
 0x191   :  { %v206_v25 = vmax.f32 %v203_v22, 0.0 }
 0x193   :  { %v213_v26 = vmul.f32 %v241_v24, %v206_v25 }
 0x195   :  { %v214_v27 = vsel %vm51_vm1, %v213_v26, 0.0 }
 0x196   :  { %215 = vadd.xlane.f32.xlu0 %v214_v27 }
 0x21f   :  { %v216_v29 = vpop.xlane.xlu0 %215 }
 0x220   :  { %v223_v30 = vadd.f32 %v242_v28, %v216_v29 }
 0x222   :  { %v243_v31 = vclamps-f32 %v223_v30, 30.0 }
 0x224   :  { %v226_v32 = vsub.f32 0.0, %v243_v31 }
 0x226   :  { %v227_v33 = vmul.f32 1.442695, %v226_v32 }
 0x228   :  { %290 = vpow2.f32 %v227_v33 }
 0x235   :  { %v291_v34 = vpop.eup %290 }
 0x236   :  { %v229_v35 = vadd.f32 1.0, %v291_v34 }
 0x238   :  { %292 = vrcp.f32 %v229_v35 }
 0x245   :  { %v293_v36 = vpop.eup %292 }
 0x246   :  { %232 = vst.msk [vmem:[%s401_s7] sm:$0xff] %vm231_vm3, %v293_v36 }

</bundles_post_ra>
